<compile_context>
chip_gen: v7x
topology: tpu7x:2x2x1
jax: 0.10.0
libtpu: 0.0.40
codegen_flags: <defaults>
</compile_context>

<pallas_src>
import functools

import jax
import jax.numpy as jnp
from jax import lax
from jax.experimental import pallas as pl
from jax.experimental.pallas import tpu as pltpu


def _label_smoothing_kernel(pred_ref, tgt_ref, out_ref, *,
                            confidence, off_value, classes, n_total, tile_n):
    # pred_ref: (TILE, C) logits block (one contiguous HBM slab per grid step)
    # tgt_ref : (1, TILE) int32 class indices
    # out_ref : (1, 1)    f32 per-tile partial sum of per-example losses
    p = pred_ref[...].astype(jnp.float32)            # f32 math (mandatory on v5e)

    # In-kernel transpose to lane-dense (C, TILE): classes on sublanes, batch
    # on the 128-lane axis.  XLU work, overlapped with the DMA of the next tile.
    pt = jnp.transpose(p)                            # (C, TILE)
    c, t = pt.shape

    # log_softmax over the class (sublane) axis, kept implicit:
    #   logp_j = shifted_j - lse
    col_max = jnp.max(pt, axis=0, keepdims=True)                     # (1, T)
    shifted = pt - col_max                                           # (C, T)
    # TODO(synk): on v7x, if profiling shows the EUP slot saturating, compute
    # the exp in bf16 with f32 accumulation (accuracy-check against f32 ref).
    lse = jnp.log(jnp.sum(jnp.exp(shifted), axis=0, keepdims=True))  # (1, T)

    sum_shifted = jnp.sum(shifted, axis=0, keepdims=True)            # (1, T)

    # shifted value at the target class (iota == tgt select + sublane sum).
    row_ids = lax.broadcasted_iota(jnp.int32, (c, t), 0)
    tgt = tgt_ref[...]                                               # (1, T)
    shifted_tgt = jnp.sum(jnp.where(row_ids == tgt, shifted, 0.0),
                          axis=0, keepdims=True)                     # (1, T)

    # -sum_j true_dist_j * logp_j, with true_dist = off everywhere and
    # confidence at the target index, algebraically folded (no (C,T) temps).
    per_ex = -(off_value * (sum_shifted - classes * lse)
               + (confidence - off_value) * (shifted_tgt - lse))     # (1, T)

    # Mask lanes past N in a ragged last tile.  Garbage logits in OOB rows
    # only affect their own lane, and the select stops any NaN/inf from
    # leaking into the tile sum (where does not propagate the unselected arm).
    base = pl.program_id(0) * tile_n
    lane = lax.broadcasted_iota(jnp.int32, (1, t), 1)
    valid = (base + lane) < n_total
    masked = jnp.where(valid, per_ex, 0.0)

    # Per-tile partial sum (keeps the grid axis "parallel"; the wrapper only
    # sums num_tiles scalars and divides by the true N).
    out_ref[...] = jnp.sum(masked, axis=1, keepdims=True).astype(out_ref.dtype)


def _vmem_limit_bytes(tile):
    # The (TILE, C=18) f32 input block pads its lane dim 18 -> 128 in VMEM.
    padded_block = tile * 128 * 4
    dense_temp = 32 * tile * 4            # one (C->sublane-padded, TILE) f32 temp
    est = (3 * padded_block               # double-buffered input + materialised load
           + 2 * 8 * tile * 4             # target (1, TILE) i32, sublane-padded, x2
           + 10 * dense_temp              # transposed working set + temporaries
           + (6 << 20))                   # slack
    # Floor near the scoped defaults; cap at what still fits v5e/v6e physical
    # VMEM.  The default tile (16K) lands around ~50 MiB, i.e. also within
    # v7x's 64 MiB/TensorCore; tiles >~24K are v6e-only territory.
    return int(min(max(est, 32 << 20), 100 << 20))


def label_smoothing_loss(pred, target, *, classes=18, smoothing=0.1,
                         tile_n=16384):
    """Pallas equivalent of LabelSmoothingLoss.forward(pred, target).

    pred:   (N, C) float logits (f32 or bf16; bf16 halves the dominant HBM read)
    target: (N,)   integer class indices
    returns scalar float32 loss (mean over batch)
    """
    n, c = pred.shape
    assert c == classes, "pred class dim must match `classes`"
    confidence = 1.0 - smoothing
    off_value = smoothing / (classes - 1)

    # Tile the batch.  Default 16K rows keeps per-grid-step overhead <~30% of
    # the HBM time while the double-buffered, lane-padded input block stays
    # within the v7x VMEM budget.  Single-tile batches are split in two so
    # both v7x TensorCores get work.
    if n <= tile_n:
        if n >= 256:
            tile = ((pl.cdiv(n, 2) + 7) // 8) * 8    # sublane-aligned half tile
        else:
            tile = n                                  # tiny batch: one tile
    else:
        tile = tile_n
    num_tiles = pl.cdiv(n, tile)

    tgt2d = target.astype(jnp.int32).reshape(1, n)    # (1, N), batch on lanes

    kernel = functools.partial(
        _label_smoothing_kernel,
        confidence=confidence,
        off_value=off_value,
        classes=classes,
        n_total=n,
        tile_n=tile,
    )

    partials = pl.pallas_call(
        kernel,
        out_shape=jax.ShapeDtypeStruct((1, num_tiles), jnp.float32),
        grid=(num_tiles,),
        in_specs=[
            pl.BlockSpec((tile, c), lambda i: (i, 0)),   # contiguous (TILE, C) slab
            pl.BlockSpec((1, tile), lambda i: (0, i)),   # target indices
        ],
        out_specs=pl.BlockSpec((1, 1), lambda i: (0, i)),  # per-tile partial sum
        compiler_params=pltpu.CompilerParams(
            dimension_semantics=("parallel",),
            vmem_limit_bytes=_vmem_limit_bytes(tile)),
    )(pred, tgt2d)

    # Global mean with the true total N (not the block-local count).
    return jnp.sum(partials) / jnp.float32(n)


def _reference_loss(pred, target, *, classes=18, smoothing=0.1):
    confidence = 1.0 - smoothing
    logp = jax.nn.log_softmax(pred.astype(jnp.float32), axis=-1)
    n, c = pred.shape
    true_dist = jnp.full((n, c), smoothing / (classes - 1), dtype=jnp.float32)
    true_dist = true_dist.at[jnp.arange(n), target].set(confidence)
    return jnp.mean(jnp.sum(-true_dist * logp, axis=-1))


if __name__ == "__main__":
    key = jax.random.PRNGKey(0)
    k1, k2, k3, k4 = jax.random.split(key, 4)

    # Small case matching the module defaults (classes=18), single tile.
    N, C = 8, 18
    pred = jax.random.normal(k1, (N, C), dtype=jnp.float32)
    target = jax.random.randint(k2, (N,), 0, C, dtype=jnp.int32)

    loss = jax.block_until_ready(
        label_smoothing_loss(pred, target, classes=C, smoothing=0.1))
    ref = _reference_loss(pred, target, classes=C, smoothing=0.1)
    assert jnp.allclose(loss, ref, atol=1e-5, rtol=1e-5), (loss, ref)

    # Default tile_n path with N <= tile_n: exercises the two-half-tile split
    # (v7x megacore) and the ragged-last-tile mask.
    N2 = 300
    pred2 = jax.random.normal(k3, (N2, C), dtype=jnp.float32)
    target2 = jax.random.randint(k4, (N2,), 0, C, dtype=jnp.int32)
    loss2 = jax.block_until_ready(
        label_smoothing_loss(pred2, target2, classes=C, smoothing=0.1))
    ref2 = _reference_loss(pred2, target2, classes=C, smoothing=0.1)
    assert jnp.allclose(loss2, ref2, atol=1e-5, rtol=1e-5), (loss2, ref2)

    # Explicit small tile: multi-tile grid (3 steps) + ragged last tile.
    loss3 = jax.block_until_ready(
        label_smoothing_loss(pred2, target2, classes=C, smoothing=0.1,
                             tile_n=128))
    assert jnp.allclose(loss3, ref2, atol=1e-5, rtol=1e-5), (loss3, ref2)

    # bf16 logits path (math stays f32 in-kernel).
    pred2_bf16 = pred2.astype(jnp.bfloat16)
    loss4 = jax.block_until_ready(
        label_smoothing_loss(pred2_bf16, target2, classes=C, smoothing=0.1))
    ref4 = _reference_loss(pred2_bf16, target2, classes=C, smoothing=0.1)
    assert jnp.allclose(loss4, ref4, atol=1e-4, rtol=1e-4), (loss4, ref4)

    print("KERNEL_OK")
</pallas_src>

<mosaic_0001>
module attributes {stable_mosaic.version = 11 : i64} {
  func.func @_label_smoothing_kernel(%arg0: i32, %arg1: memref<8x18xf32, #tpu.memory_space<vmem>>, %arg2: memref<1x8xi32, #tpu.memory_space<vmem>>, %arg3: memref<1x1xf32, #tpu.memory_space<vmem>>) attributes {dimension_semantics = [#tpu.dimension_semantics<parallel>], iteration_bounds = array<i64: 1>, scalar_prefetch = 0 : i64, scratch_operands = 0 : i64, tpu.core_type = #tpu.core_type<tc>, window_params = [{transform_indices = @transform_0, window_bounds = array<i64: 8, 18>}, {transform_indices = @transform_1, window_bounds = array<i64: 1, 8>}, {transform_indices = @transform_2, window_bounds = array<i64: 1, 1>}]} {
    %c0 = arith.constant 0 : index
    %c0_0 = arith.constant 0 : index
    %0 = vector.load %arg1[%c0, %c0_0] : memref<8x18xf32, #tpu.memory_space<vmem>>, vector<8x18xf32>
    %1 = tpu.transpose %0, [1, 0] : vector<8x18xf32> -> vector<18x8xf32>
    %cst = arith.constant dense<0xFF800000> : vector<8xf32>
    %2 = vector.multi_reduction <maximumf>, %1, %cst [0] : vector<18x8xf32> to vector<8xf32>
    %3 = vector.shape_cast %2 : vector<8xf32> to vector<1x8xf32>
    %4 = vector.broadcast %3 : vector<1x8xf32> to vector<18x8xf32>
    %5 = arith.subf %1, %4 : vector<18x8xf32>
    %6 = math.exp %5 : vector<18x8xf32>
    %cst_1 = arith.constant dense<0.000000e+00> : vector<8xf32>
    %7 = vector.multi_reduction <add>, %6, %cst_1 [0] : vector<18x8xf32> to vector<8xf32>
    %8 = vector.shape_cast %7 : vector<8xf32> to vector<1x8xf32>
    %9 = math.log %8 : vector<1x8xf32>
    %cst_2 = arith.constant dense<0.000000e+00> : vector<8xf32>
    %10 = vector.multi_reduction <add>, %5, %cst_2 [0] : vector<18x8xf32> to vector<8xf32>
    %11 = vector.shape_cast %10 : vector<8xf32> to vector<1x8xf32>
    %12 = tpu.iota {dimensions = array<i32: 0>} : vector<18x8xi32>
    %c0_3 = arith.constant 0 : index
    %c0_4 = arith.constant 0 : index
    %13 = vector.load %arg2[%c0_3, %c0_4] : memref<1x8xi32, #tpu.memory_space<vmem>>, vector<1x8xi32>
    %14 = vector.broadcast %13 : vector<1x8xi32> to vector<18x8xi32>
    %15 = arith.cmpi eq, %12, %14 : vector<18x8xi32>
    %cst_5 = arith.constant 0.000000e+00 : f32
    %16 = vector.broadcast %cst_5 : f32 to vector<18x8xf32>
    %17 = arith.select %15, %5, %16 : vector<18x8xi1>, vector<18x8xf32>
    %cst_6 = arith.constant dense<0.000000e+00> : vector<8xf32>
    %18 = vector.multi_reduction <add>, %17, %cst_6 [0] : vector<18x8xf32> to vector<8xf32>
    %19 = vector.shape_cast %18 : vector<8xf32> to vector<1x8xf32>
    %cst_7 = arith.constant 1.800000e+01 : f32
    %20 = vector.broadcast %cst_7 : f32 to vector<1x8xf32>
    %21 = arith.mulf %20, %9 : vector<1x8xf32>
    %22 = arith.subf %11, %21 : vector<1x8xf32>
    %cst_8 = arith.constant 0.00588235306 : f32
    %23 = vector.broadcast %cst_8 : f32 to vector<1x8xf32>
    %24 = arith.mulf %23, %22 : vector<1x8xf32>
    %25 = arith.subf %19, %9 : vector<1x8xf32>
    %cst_9 = arith.constant 0.894117653 : f32
    %26 = vector.broadcast %cst_9 : f32 to vector<1x8xf32>
    %27 = arith.mulf %26, %25 : vector<1x8xf32>
    %28 = arith.addf %24, %27 : vector<1x8xf32>
    %cst_10 = arith.constant 0.000000e+00 : f32
    %29 = vector.broadcast %cst_10 : f32 to vector<1x8xf32>
    %30 = arith.subf %29, %28 : vector<1x8xf32>
    %c8_i32 = arith.constant 8 : i32
    %31 = arith.muli %arg0, %c8_i32 : i32
    %32 = tpu.iota {dimensions = array<i32: 1>} : vector<1x8xi32>
    %33 = vector.broadcast %31 : i32 to vector<1x8xi32>
    %34 = arith.addi %33, %32 : vector<1x8xi32>
    %c8_i32_11 = arith.constant 8 : i32
    %35 = vector.broadcast %c8_i32_11 : i32 to vector<1x8xi32>
    %36 = arith.cmpi slt, %34, %35 : vector<1x8xi32>
    %cst_12 = arith.constant 0.000000e+00 : f32
    %37 = vector.broadcast %cst_12 : f32 to vector<1x8xf32>
    %38 = arith.select %36, %30, %37 : vector<1x8xi1>, vector<1x8xf32>
    %cst_13 = arith.constant dense<0.000000e+00> : vector<1xf32>
    %39 = vector.multi_reduction <add>, %38, %cst_13 [1] : vector<1x8xf32> to vector<1xf32>
    %40 = vector.shape_cast %39 : vector<1xf32> to vector<1x1xf32>
    %c0_14 = arith.constant 0 : index
    %c0_15 = arith.constant 0 : index
    %41 = vector.load %arg3[%c0_14, %c0_15] : memref<1x1xf32, #tpu.memory_space<vmem>>, vector<1x1xf32>
    tpu.vector_store %arg3[%c0_14, %c0_15], %40 {strides = array<i32>} : memref<1x1xf32, #tpu.memory_space<vmem>>, vector<1x1xf32>,
    return
  }
  func.func @transform_0(%arg0: i32) -> (i32, i32) {
    %c0_i32 = arith.constant 0 : i32
    %c0_i32_0 = arith.constant 0 : i32
    return %arg0, %c0_i32 : i32, i32
  }
  func.func @transform_1(%arg0: i32) -> (i32, i32) {
    %c0_i32 = arith.constant 0 : i32
    %c0_i32_0 = arith.constant 0 : i32
    return %c0_i32, %arg0 : i32, i32
  }
  func.func @transform_2(%arg0: i32) -> (i32, i32) {
    %c0_i32 = arith.constant 0 : i32
    %c0_i32_0 = arith.constant 0 : i32
    return %c0_i32, %arg0 : i32, i32
  }
}

</mosaic_0001>

<bundles_post_ra>
// kernel: tpu_custom_call.1
= control target key start
LH: loop header
LB: loop body
LE: loop exit
PB: predicated region body
PF: predicated region fallthrough
CT: control target
= control target key end

     0   :  { %7 = vsyncpa [#allocation3], 0  ;;  %s282_s0 = inlined_call_operand.hbm [shape: f32[8,18], index: 0, kind: input, shape index: {}]   ;;  %s283_s1 = inlined_call_operand.vmem [shape: s32[1,8], index: 1, kind: input, shape index: {}]   ;;  %s284_s2 = inlined_call_operand.hbm [shape: f32[1,1], index: 2, kind: output, shape index: {}]  }
   0x1   :  { %8 = vsyncpa [#allocation4], 0  ;;  %s223_s9 = smov [#allocation2]   ;;  %s175_s13 = scalar_lea.hbm %s282_s0, 128 }
   0x2   :  { %s15_s10 = sshll.u32 %s223_s9, 4  ;;  %p176_p0 = scmp.ne.s32.totalorder %s282_s0, %s175_s13  ;;  %s16_s10 = int_to_ptr.vmem [resolvable:$true] %s15_s10 }
   0x3   :  { %p179_p1 = scmp.lt.u32.totalorder %s175_s13, %s282_s0 }
   0x5   :  { %p181_p2 = pnand %p179_p1, %p176_p0 }
   0x7   :  { %184 = shalt.err (!%p181_p2)
}
   0x8   :  { %s185_s18 = scalar_lea.vmem %s16_s10, 128  ;;  %p190_p4 = scmp.lt.s32.totalorder %s16_s10, %s16_s10 }
   0x9   :  { %p186_p3 = scmp.ne.s32.totalorder %s16_s10, %s185_s18  ;;  %p191_p5 = scmp.lt.s32.totalorder %s185_s18, %s185_s18 }
   0xb   :  { %p192_p6 = por %p191_p5, %p190_p4 }
   0xd   :  { %p193_p7 = pnand %p192_p6, %p186_p3 }
   0xf   :  { %196 = shalt.err (!%p193_p7)
}
  0x10   :  { %18 = dma.hbm_to_vmem [thread:$0]  %s282_s0, 128, %s16_s10, [#allocation3]  }
  0x11   :  { %219 = dma.done.wait [#allocation3], 128  }
  0x12   :  { %220 = vsyncadd [#allocation3], 4294967168  ;;  %v24_v0 = vld [vmem:[#allocation2] sm:$0xff]  ;;  %vm57_vm0 = vcmask 64512   ;;  %vm60_vm1 = vcmask 58368   ;;  %v103_v13 = vlaneseq  ;;  %vm146_vm6 = vcmask 0  }
  0x13   :  { %25 = vxpose.xlu0.b32.start.end [1/1] (short) (narrow) %v24_v0, 24  ;;  %v163_v24 = vld [vmem:[%s283_s1] ss:$0 sm:$0xff]  ;;  %s224_s1 = smov [#allocation5]  }
  0x14   :  { %v104_v16 = vshrl.u32 %v103_v13, 7  ;;  %s154_s22 = sshll.u32 %s224_s1, 4  ;;  %s155_s22 = int_to_ptr.vmem [resolvable:$true] %s154_s22 }
  0x15   :  { %s197_s23 = scalar_lea.vmem %s155_s22, 16  ;;  %s201_s24 = scalar_lea.vmem %s155_s22, 32 }
  0x16   :  { %v105_v23 = vadd.s32 8, %v104_v16  ;;  %vm112_vm2 = vcmp.eq.s32.totalorder %v104_v16, %v163_v24  ;;  %v106_v25 = vadd.s32 16, %v104_v16  ;;  %p198_p8 = scmp.ne.s32.totalorder %s155_s22, %s197_s23  ;;  %p202_p9 = scmp.lt.s32.totalorder %s155_s22, %s155_s22 }
  0x17   :  { %p203_p10 = scmp.lt.s32.totalorder %s201_s24, %s197_s23 }
  0x18   :  { %vm113_vm3 = vcmp.eq.s32.totalorder %v105_v23, %v163_v24  ;;  %vm114_vm4 = vcmp.eq.s32.totalorder %v106_v25, %v163_v24 }
  0x19   :  { %p204_p11 = por %p203_p10, %p202_p9 }
  0x1b   :  { %p205_p12 = pnand %p204_p11, %p198_p8 }
  0x93   :  { %v41_v1 = vpop.trf.xlu0 }
  0x94   :  { %v58_v4 = vsel %vm57_vm0, %v41_v1, -inf }
  0x97   :  { %v42_v2 = vpop.trf.xlu0 }
  0x98   :  { %v59_v3 = vsel %vm57_vm0, %v42_v2, -inf }
  0x99   :  { %v62_v5 = vmax.f32 %v58_v4, %v59_v3 }
  0x9b   :  { %v43_v6 = vpop.trf.xlu0 }
  0x9c   :  { %v61_v7 = vsel %vm60_vm1, %v43_v6, -inf }
  0x9d   :  { %v63_v8 = vmax.f32 %v62_v5, %v61_v7 }
  0x9f   :  { %v64_v9 = vrot.slane %v63_v8, 4 }
  0xa1   :  { %v65_v10 = vmax.f32 %v63_v8, %v64_v9 }
  0xa3   :  { %v66_v11 = vrot.slane %v65_v10, 2 }
  0xa5   :  { %v67_v12 = vmax.f32 %v65_v10, %v66_v11 }
  0xa7   :  { %v68_v14 = vrot.slane %v67_v12, 1 }
  0xa9   :  { %v69_v15 = vmax.f32 %v67_v12, %v68_v14 }
  0xab   :  { %v70_v17 = vsub.f32 %v41_v1, %v69_v15  ;;  %v71_v18 = vsub.f32 %v42_v2, %v69_v15  ;;  %v72_v19 = vsub.f32 %v43_v6, %v69_v15  ;;  %v138_v6 = vand.u32 127, %v103_v13 }
  0xad   :  { %v73_v20 = vmul.f32 1.442695, %v70_v17  ;;  %v75_v21 = vmul.f32 1.442695, %v71_v18  ;;  %v77_v22 = vmul.f32 1.442695, %v72_v19 }
  0xae   :  { %v115_v26 = vsel %vm112_vm2, %v70_v17, 0.0  ;;  %v116_v27 = vsel %vm113_vm3, %v71_v18, 0.0  ;;  %v92_v33 = vsel %vm57_vm0, %v70_v17, 0.0  ;;  %v93_v34 = vsel %vm57_vm0, %v71_v18, 0.0 }
  0xaf   :  { %167 = vpow2.f32 %v73_v20  ;;  %v118_v28 = vsel %vm57_vm0, %v115_v26, 0.0  ;;  %v119_v29 = vsel %vm57_vm0, %v116_v27, 0.0  ;;  %v117_v37 = vsel %vm114_vm4, %v72_v19, 0.0 }
  0xb0   :  { %169 = vpow2.f32 %v75_v21  ;;  %v120_v38 = vadd.f32 %v119_v29, %v118_v28  ;;  %v94_v41 = vadd.f32 %v93_v34, %v92_v33  ;;  %v121_v43 = vsel %vm60_vm1, %v117_v37, 0.0 }
  0xb1   :  { %171 = vpow2.f32 %v77_v22  ;;  %v95_v46 = vsel %vm60_vm1, %v72_v19, 0.0  ;;  %vm141_vm5 = vcmp.lt.s32.totalorder %v138_v6, 8 }
  0xb2   :  { %v122_v44 = vadd.f32 %v121_v43, %v120_v38  ;;  %v96_v47 = vadd.f32 %v95_v46, %v94_v41 }
  0xb4   :  { %v123_v49 = vrot.slane %v122_v44, 4  ;;  %v97_v51 = vrot.slane %v96_v47, 4 }
  0xb6   :  { %v124_v53 = vadd.f32 %v123_v49, %v122_v44  ;;  %v98_v55 = vadd.f32 %v97_v51, %v96_v47 }
  0xb8   :  { %v125_v57 = vrot.slane %v124_v53, 2  ;;  %v99_v58 = vrot.slane %v98_v55, 2 }
  0xb9   :  { %v168_v30 = vpop.eup %167 }
  0xba   :  { %v170_v31 = vpop.eup %169  ;;  %v79_v32 = vsel %vm57_vm0, %v168_v30, 0.0  ;;  %v126_v59 = vadd.f32 %v125_v57, %v124_v53  ;;  %v100_v60 = vadd.f32 %v99_v58, %v98_v55 }
  0xbb   :  { %v172_v35 = vpop.eup %171  ;;  %v80_v36 = vsel %vm57_vm0, %v170_v31, 0.0 }
  0xbc   :  { %v81_v39 = vadd.f32 %v80_v36, %v79_v32  ;;  %v82_v40 = vsel %vm60_vm1, %v172_v35, 0.0  ;;  %v127_v61 = vrot.slane %v126_v59, 1  ;;  %v101_v62 = vrot.slane %v100_v60, 1 }
  0xbe   :  { %v83_v42 = vadd.f32 %v82_v40, %v81_v39  ;;  %v128_v1 = vadd.f32 %v127_v61, %v126_v59  ;;  %v102_v2 = vadd.f32 %v101_v62, %v100_v60 }
  0xc0   :  { %v84_v45 = vrot.slane %v83_v42, 4 }
  0xc2   :  { %v85_v48 = vadd.f32 %v84_v45, %v83_v42 }
  0xc4   :  { %v86_v50 = vrot.slane %v85_v48, 2 }
  0xc6   :  { %v87_v52 = vadd.f32 %v86_v50, %v85_v48 }
  0xc8   :  { %v88_v54 = vrot.slane %v87_v52, 1 }
  0xca   :  { %v89_v56 = vadd.f32 %v88_v54, %v87_v52 }
  0xcc   :  { %173 = vlog2.f32 %v89_v56 }
  0xd6   :  { %v174_v63 = vpop.eup %173 }
  0xd7   :  { %v91_v0 = vmul.f32 0.6931472, %v174_v63 }
  0xd9   :  { %v129_v3 = vmul.f32 18.0, %v91_v0  ;;  %v132_v4 = vsub.f32 %v128_v1, %v91_v0 }
  0xdb   :  { %v130_v5 = vsub.f32 %v102_v2, %v129_v3  ;;  %v133_v8 = vmul.f32 0.89411765, %v132_v4 }
  0xdd   :  { %v131_v7 = vmul.f32 0.005882353, %v130_v5 }
  0xdf   :  { %v134_v9 = vadd.f32 %v133_v8, %v131_v7 }
  0xe1   :  { %v135_v10 = vsub.f32 0.0, %v134_v9 }
  0xe3   :  { %v142_v11 = vsel %vm141_vm5, %v135_v10, 0.0 }
  0xe4   :  { %v143_v12 = vsel %vm57_vm0, %v142_v11, 0.0 }
  0xe5   :  { %144 = vadd.xlane.f32.xlu0 %v143_v12 }
 0x172   :  { %v145_v14 = vpop.xlane.xlu0 %144 }
 0x173   :  { %147 = vst.msk [vmem:[#allocation5] sm:$0x1] %vm146_vm6, %v145_v14 }
 0x174   :  { %208 = shalt.err (!%p205_p12)
}
 0x175   :  { %s209_s27 = scalar_lea.hbm %s284_s2, 16 }
 0x176   :  { %p210_p13 = scmp.ne.s32.totalorder %s284_s2, %s209_s27  ;;  %p213_p0 = scmp.lt.u32.totalorder %s209_s27, %s284_s2 }
 0x178   :  { %p215_p1 = pnand %p213_p0, %p210_p13 }
 0x17a   :  { %218 = shalt.err (!%p215_p1)
}
 0x17b   :  { %157 = dma.vmem_to_hbm [thread:$0]  %s155_s22, 16, %s284_s2, [#allocation4]  }
 0x17c   :  { %221 = dma.done.wait [#allocation4], 16  }
 0x17d   :  { %222 = vsyncadd [#allocation4], 4294967280 }
 0x17e   :  { %161 = vsyncpa [#allocation3], 1 }
 0x17f   :  { %162 = vsyncpa [#allocation4], 1 }

</bundles_post_ra>
